<compile_context>
chip_gen: v6e
topology: v6e:2x2x1
jax: 0.10.0
libtpu: 0.0.40
codegen_flags: <defaults>
</compile_context>

<pallas_src>
import jax
import jax.numpy as jnp
from jax.experimental import pallas as pl
from jax.experimental.pallas import tpu as pltpu

_LANE = 128                        # block_m is kept a multiple of this
_X_BLOCK_TARGET_BYTES = 4 << 20    # ~4 MiB x tile -> near HBM roofline
_MAX_BLOCK_M = 2048                # keep the grid long (megacore sharding)


def _value_head_kernel(x_ref, w_ref, b_ref, o_ref):
    # x_ref: (block_m, H) VMEM tile of hidden states
    # w_ref: (1, H)       VMEM lane-dense weight row
    # b_ref: (1,)         SMEM bias scalar
    # o_ref: (block_m, 1) VMEM output block
    # Dropout in eval mode == identity; the hot path is a mem-bound matvec done
    # on the VPU (broadcast mul) + XLU (lane reduce) -- MXU is left idle.
    # TODO(synk): training-mode dropout (Bernoulli mask + 1/(1-p) scale via
    #             pltpu.prng_random_bits) is not implemented; eval semantics only.
    prod = x_ref[...].astype(jnp.float32) * w_ref[...].astype(jnp.float32)
    acc = jnp.sum(prod, axis=-1, keepdims=True)           # (block_m, 1), f32
    o_ref[...] = (acc + b_ref[0]).astype(o_ref.dtype)     # bias as SMEM scalar


def _choose_block_m(m, h, itemsize):
    """Rows per grid step: ~4 MiB of x, multiple of 128, capped at 2048."""
    bm = (_X_BLOCK_TARGET_BYTES // max(1, h * itemsize)) // _LANE * _LANE
    bm = max(_LANE, min(bm, _MAX_BLOCK_M))
    bm = min(bm, pl.cdiv(m, _LANE) * _LANE)   # never exceed padded problem size
    return max(bm, _LANE)


def _vmem_limit_bytes(block_m, h, itemsize):
    x_bufs = 3 * block_m * h * itemsize       # up to triple-buffered input
    w_bufs = 2 * h * itemsize
    o_bufs = 2 * block_m * itemsize
    budget = x_bufs + w_bufs + o_bufs + (4 << 20)          # compiler headroom
    # At least the conservative default, well under v7x's 64 MiB physical VMEM.
    return int(min(max(budget, 16 << 20), 48 << 20))


def _x_block_spec(block_m, h, n_blocks):
    block_shape = (block_m, h)
    index_map = lambda i: (i, 0)
    if n_blocks > 1 and hasattr(pl, "Buffered"):
        try:
            # Deeper input pipelining: essentially zero compute per byte, so a
            # third buffer smooths HBM read bursts (one extra x block of VMEM).
            return pl.BlockSpec(block_shape, index_map,
                                pipeline_mode=pl.Buffered(3))
        except TypeError:
            pass
    return pl.BlockSpec(block_shape, index_map)


def value_head_forward(x, weight, bias, *, block_m=None):
    """x: (..., H) float array; weight: (1, H); bias: (1,). Returns (...)."""
    orig_shape = x.shape
    H = orig_shape[-1]
    M = 1
    for d in orig_shape[:-1]:
        M *= d
    itemsize = jnp.dtype(x.dtype).itemsize

    if block_m is None:
        block_m = _choose_block_m(M, H, itemsize)
    assert block_m % _LANE == 0, "block_m must be a multiple of 128"

    n_blocks = pl.cdiv(M, block_m)
    m_pad = n_blocks * block_m
    grid = (n_blocks,)

    x2d = x.reshape(M, H)
    if m_pad != M:
        x2d = jnp.pad(x2d, ((0, m_pad - M), (0, 0)))        # zero tail rows
    w_row = weight.reshape(1, H)                             # lane-dense (1, H)
    b1 = bias.reshape(1).astype(jnp.float32)                 # SMEM scalar

    cost = pl.CostEstimate(
        flops=2 * m_pad * H,
        transcendentals=0,
        bytes_accessed=m_pad * H * itemsize + H * itemsize + m_pad * itemsize,
    )

    out2d = pl.pallas_call(
        _value_head_kernel,
        out_shape=jax.ShapeDtypeStruct((m_pad, 1), x.dtype),
        grid_spec=pltpu.PrefetchScalarGridSpec(
            num_scalar_prefetch=0,
            grid=grid,
            in_specs=[
                _x_block_spec(block_m, H, n_blocks),
                pl.BlockSpec((1, H), lambda i: (0, 0)),                  # weight
                pl.BlockSpec(memory_space=pltpu.MemorySpace.SMEM),       # bias
            ],
            out_specs=pl.BlockSpec((block_m, 1), lambda i: (i, 0)),
        ),
        compiler_params=pltpu.CompilerParams(
            dimension_semantics=("parallel",),
            vmem_limit_bytes=_vmem_limit_bytes(block_m, H, itemsize),
        ),
        cost_estimate=cost,
    )(x2d, w_row, b1)

    # drop padded rows, squeeze(dim=-1), restore leading dims
    return out2d[:M, 0].reshape(orig_shape[:-1])


def init_value_head_params(input_size, key):
    # Deterministic init mirroring nn.Linear(in_features=input_size, out_features=1)
    kw, kb = jax.random.split(key)
    bound = 1.0 / jnp.sqrt(input_size)
    weight = jax.random.uniform(kw, (1, input_size), jnp.float32, -bound, bound)
    bias = jax.random.uniform(kb, (1,), jnp.float32, -bound, bound)
    return weight, bias


if __name__ == "__main__":
    key = jax.random.PRNGKey(0)

    # --- Test 1: module-sized small case (single block path) ---
    B, S, H = 2, 8, 32
    k_x, k_p, k_x2, k_p2 = jax.random.split(key, 4)
    x = jax.random.normal(k_x, (B, S, H), dtype=jnp.float32)
    weight, bias = init_value_head_params(H, k_p)

    out = value_head_forward(x, weight, bias)
    out = jax.block_until_ready(out)

    ref = (x @ weight.T + bias)[..., 0]     # eval-mode dropout == identity
    assert out.shape == (B, S), out.shape
    assert jnp.allclose(out, ref, atol=1e-5, rtol=1e-5)

    # --- Test 2: multi-block path (cdiv grid + tail padding + pipelining) ---
    B2, S2, H2 = 3, 100, 64                 # M=300 -> padded to 384, grid=3
    x2 = jax.random.normal(k_x2, (B2, S2, H2), dtype=jnp.float32)
    weight2, bias2 = init_value_head_params(H2, k_p2)

    out2 = value_head_forward(x2, weight2, bias2, block_m=128)
    out2 = jax.block_until_ready(out2)

    ref2 = (x2 @ weight2.T + bias2)[..., 0]
    assert out2.shape == (B2, S2), out2.shape
    assert jnp.allclose(out2, ref2, atol=1e-5, rtol=1e-5)

    print("KERNEL_OK")
</pallas_src>

<mosaic_0001>
module attributes {stable_mosaic.version = 11 : i64} {
  func.func @_value_head_kernel(%arg0: i32, %arg1: memref<128x32xf32, #tpu.memory_space<vmem>>, %arg2: memref<1x32xf32, #tpu.memory_space<vmem>>, %arg3: memref<1xf32, #tpu.memory_space<smem>>, %arg4: memref<128x1xf32, #tpu.memory_space<vmem>>) attributes {dimension_semantics = [#tpu.dimension_semantics<parallel>], iteration_bounds = array<i64: 1>, scalar_prefetch = 0 : i64, scratch_operands = 0 : i64, tpu.core_type = #tpu.core_type<tc>, window_params = [{transform_indices = @transform_0, window_bounds = array<i64: 128, 32>}, {pipeline_mode = #tpu.pipeline_mode<synchronous>, transform_indices = @transform_1, window_bounds = array<i64: 1, 32>}, {transform_indices = @transform_2, window_bounds = array<i64: 1>}, {transform_indices = @transform_3, window_bounds = array<i64: 128, 1>}]} {
    %c0 = arith.constant 0 : index
    %c0_0 = arith.constant 0 : index
    %0 = vector.load %arg1[%c0, %c0_0] : memref<128x32xf32, #tpu.memory_space<vmem>>, vector<128x32xf32>
    %c0_1 = arith.constant 0 : index
    %c0_2 = arith.constant 0 : index
    %1 = vector.load %arg2[%c0_1, %c0_2] : memref<1x32xf32, #tpu.memory_space<vmem>>, vector<1x32xf32>
    %2 = vector.broadcast %1 : vector<1x32xf32> to vector<128x32xf32>
    %3 = arith.mulf %0, %2 : vector<128x32xf32>
    %cst = arith.constant dense<0.000000e+00> : vector<128xf32>
    %4 = vector.multi_reduction <add>, %3, %cst [1] : vector<128x32xf32> to vector<128xf32>
    %5 = vector.shape_cast %4 : vector<128xf32> to vector<128x1xf32>
    %c0_3 = arith.constant 0 : index
    %6 = memref.load %arg3[%c0_3] : memref<1xf32, #tpu.memory_space<smem>>
    %7 = vector.broadcast %6 : f32 to vector<128x1xf32>
    %8 = arith.addf %5, %7 : vector<128x1xf32>
    %c0_4 = arith.constant 0 : index
    %c0_5 = arith.constant 0 : index
    %9 = vector.load %arg4[%c0_4, %c0_5] : memref<128x1xf32, #tpu.memory_space<vmem>>, vector<128x1xf32>
    tpu.vector_store %arg4[%c0_4, %c0_5], %8 {strides = array<i32>} : memref<128x1xf32, #tpu.memory_space<vmem>>, vector<128x1xf32>,
    return
  }
  func.func @transform_0(%arg0: i32) -> (i32, i32) {
    %c0_i32 = arith.constant 0 : i32
    %c0_i32_0 = arith.constant 0 : i32
    return %arg0, %c0_i32 : i32, i32
  }
  func.func @transform_1(%arg0: i32) -> (i32, i32) {
    %c0_i32 = arith.constant 0 : i32
    %c0_i32_0 = arith.constant 0 : i32
    %c0_i32_1 = arith.constant 0 : i32
    return %c0_i32, %c0_i32_0 : i32, i32
  }
  func.func @transform_2(%arg0: i32) -> i32 {
    %c0_i32 = arith.constant 0 : i32
    %c0_i32_0 = arith.constant 0 : i32
    return %c0_i32 : i32
  }
  func.func @transform_3(%arg0: i32) -> (i32, i32) {
    %c0_i32 = arith.constant 0 : i32
    %c0_i32_0 = arith.constant 0 : i32
    return %arg0, %c0_i32 : i32, i32
  }
}

</mosaic_0001>

<bundles_post_ra>
// kernel: tpu_custom_call.1
= control target key start
LH: loop header
LB: loop body
LE: loop exit
PB: predicated region body
PF: predicated region fallthrough
CT: control target
= control target key end

     0   :  { %vm54_vm0 = vcmask 261120   ;;  %vm121_vm1 = vcmask 7168   ;;  %s297_s0 = inlined_call_operand.vmem [shape: f32[128,32], index: 0, kind: input, shape index: {}]   ;;  %s298_s1 = inlined_call_operand.vmem [shape: f32[1,32], index: 1, kind: input, shape index: {}]   ;;  %s299_s2 = inlined_call_operand.<no memory space> [shape: f32[1], index: 2, kind: input, shape index: {}]   ;;  %s300_s3 = inlined_call_operand.vmem [shape: f32[128,1], index: 3, kind: output, shape index: {}]  }
   0x1   :  { %v17_v0 = vld [vmem:[%s297_s0 + $0x10] sm:$0xff]  ;;  %v142_v1 = vld [vmem:[%s298_s1] ss:$0 sm:$0xff]  ;;  %v18_v5 = vld [vmem:[%s297_s0 + $0x18] sm:$0xff]  ;;  %v104_v49 = vstv %s299_s2 }
   0x2   :  { %v15_v2 = vld [vmem:[%s297_s0] sm:$0xff]  ;;  %v40_v3 = vmul.f32 %v142_v1, %v17_v0  ;;  %v16_v6 = vld [vmem:[%s297_s0 + $0x8] sm:$0xff]  ;;  %v41_v7 = vmul.f32 %v142_v1, %v18_v5  ;;  %v22_v17 = vld [vmem:[%s297_s0 + $0x38] sm:$0xff] }
   0x3   :  { %v38_v4 = vmul.f32 %v142_v1, %v15_v2  ;;  %v39_v8 = vmul.f32 %v142_v1, %v16_v6  ;;  %v20_v9 = vld [vmem:[%s297_s0 + $0x28] sm:$0xff]  ;;  %v19_v10 = vld [vmem:[%s297_s0 + $0x20] sm:$0xff]  ;;  %v21_v18 = vld [vmem:[%s297_s0 + $0x30] sm:$0xff]  ;;  %v45_v21 = vmul.f32 %v142_v1, %v22_v17 }
   0x4   :  { %v61_v11 = vsel %vm54_vm0, %v40_v3, 0.0  ;;  %v64_v13 = vsel %vm54_vm0, %v41_v7, 0.0  ;;  %v43_v15 = vmul.f32 %v142_v1, %v20_v9  ;;  %v42_v16 = vmul.f32 %v142_v1, %v19_v10  ;;  %v24_v23 = vld [vmem:[%s297_s0 + $0x48] sm:$0xff]  ;;  %v23_v24 = vld [vmem:[%s297_s0 + $0x40] sm:$0xff]  ;;  %v26_v29 = vld [vmem:[%s297_s0 + $0x58] sm:$0xff] }
   0x5   :  { %v55_v12 = vsel %vm54_vm0, %v38_v4, 0.0  ;;  %62 = vadd.xlane.f32.xlu1 %v61_v11  ;;  %v58_v14 = vsel %vm54_vm0, %v39_v8, 0.0  ;;  %v44_v22 = vmul.f32 %v142_v1, %v21_v18  ;;  %v76_v25 = vsel %vm54_vm0, %v45_v21, 0.0  ;;  %v25_v30 = vld [vmem:[%s297_s0 + $0x50] sm:$0xff]  ;;  %v28_v35 = vld [vmem:[%s297_s0 + $0x68] sm:$0xff]  ;;  %v27_v36 = vld [vmem:[%s297_s0 + $0x60] sm:$0xff] }
   0x6   :  { %56 = vadd.xlane.f32.xlu0 %v55_v12  ;;  %v70_v19 = vsel %vm54_vm0, %v43_v15, 0.0  ;;  %v67_v20 = vsel %vm54_vm0, %v42_v16, 0.0  ;;  %v47_v27 = vmul.f32 %v142_v1, %v24_v23  ;;  %v46_v28 = vmul.f32 %v142_v1, %v23_v24  ;;  %v30_v41 = vld [vmem:[%s297_s0 + $0x78] sm:$0xff]  ;;  %v29_v42 = vld [vmem:[%s297_s0 + $0x70] sm:$0xff] }
   0x7   :  { %v73_v26 = vsel %vm54_vm0, %v44_v22, 0.0  ;;  %v49_v33 = vmul.f32 %v142_v1, %v26_v29  ;;  %v48_v34 = vmul.f32 %v142_v1, %v25_v30  ;;  %v51_v39 = vmul.f32 %v142_v1, %v28_v35 }
   0x8   :  { %v82_v31 = vsel %vm54_vm0, %v47_v27, 0.0  ;;  %v79_v32 = vsel %vm54_vm0, %v46_v28, 0.0  ;;  %v50_v40 = vmul.f32 %v142_v1, %v27_v36  ;;  %v53_v45 = vmul.f32 %v142_v1, %v30_v41 }
   0x9   :  { %65 = vadd.xlane.f32.xlu1 %v64_v13  ;;  %v88_v37 = vsel %vm54_vm0, %v49_v33, 0.0  ;;  %v85_v38 = vsel %vm54_vm0, %v48_v34, 0.0  ;;  %v94_v43 = vsel %vm54_vm0, %v51_v39, 0.0  ;;  %v52_v46 = vmul.f32 %v142_v1, %v29_v42 }
   0xa   :  { %59 = vadd.xlane.f32.xlu0 %v58_v14  ;;  %v91_v44 = vsel %vm54_vm0, %v50_v40, 0.0  ;;  %v100_v47 = vsel %vm54_vm0, %v53_v45, 0.0 }
   0xb   :  { %v97_v48 = vsel %vm54_vm0, %v52_v46, 0.0 }
   0xd   :  { %71 = vadd.xlane.f32.xlu1 %v70_v19 }
   0xe   :  { %68 = vadd.xlane.f32.xlu0 %v67_v20 }
  0x11   :  { %77 = vadd.xlane.f32.xlu1 %v76_v25 }
  0x12   :  { %74 = vadd.xlane.f32.xlu0 %v73_v26 }
  0x15   :  { %83 = vadd.xlane.f32.xlu1 %v82_v31 }
  0x16   :  { %80 = vadd.xlane.f32.xlu0 %v79_v32 }
  0x19   :  { %89 = vadd.xlane.f32.xlu1 %v88_v37 }
  0x1a   :  { %86 = vadd.xlane.f32.xlu0 %v85_v38 }
  0x1d   :  { %95 = vadd.xlane.f32.xlu1 %v94_v43 }
  0x1e   :  { %92 = vadd.xlane.f32.xlu0 %v91_v44 }
  0x21   :  { %101 = vadd.xlane.f32.xlu1 %v100_v47 }
  0x22   :  { %98 = vadd.xlane.f32.xlu0 %v97_v48 }
  0x8e   :  { %v63_v50 = vpop.xlane.xlu1 %62 }
  0x8f   :  { %v57_v51 = vpop.xlane.xlu0 %56  ;;  %v107_v52 = vadd.f32 %v104_v49, %v63_v50 }
  0x90   :  { %v105_v53 = vadd.f32 %v104_v49, %v57_v51 }
  0x91   :  { %124 = vst.msk [vmem:[%s300_s3 + $0x10] sm:$0xff] %vm121_vm1, %v107_v52 }
  0x92   :  { %122 = vst.msk [vmem:[%s300_s3] sm:$0xff] %vm121_vm1, %v105_v53  ;;  %v66_v54 = vpop.xlane.xlu1 %65 }
  0x93   :  { %v60_v55 = vpop.xlane.xlu0 %59  ;;  %v108_v56 = vadd.f32 %v104_v49, %v66_v54 }
  0x94   :  { %v106_v57 = vadd.f32 %v104_v49, %v60_v55 }
  0x95   :  { %125 = vst.msk [vmem:[%s300_s3 + $0x18] sm:$0xff] %vm121_vm1, %v108_v56 }
  0x96   :  { %123 = vst.msk [vmem:[%s300_s3 + $0x8] sm:$0xff] %vm121_vm1, %v106_v57  ;;  %v72_v58 = vpop.xlane.xlu1 %71 }
  0x97   :  { %v69_v59 = vpop.xlane.xlu0 %68  ;;  %v110_v60 = vadd.f32 %v104_v49, %v72_v58 }
  0x98   :  { %v109_v61 = vadd.f32 %v104_v49, %v69_v59 }
  0x99   :  { %127 = vst.msk [vmem:[%s300_s3 + $0x28] sm:$0xff] %vm121_vm1, %v110_v60 }
  0x9a   :  { %126 = vst.msk [vmem:[%s300_s3 + $0x20] sm:$0xff] %vm121_vm1, %v109_v61  ;;  %v78_v62 = vpop.xlane.xlu1 %77 }
  0x9b   :  { %v75_v63 = vpop.xlane.xlu0 %74  ;;  %v112_v0 = vadd.f32 %v104_v49, %v78_v62 }
  0x9c   :  { %v111_v1 = vadd.f32 %v104_v49, %v75_v63 }
  0x9d   :  { %129 = vst.msk [vmem:[%s300_s3 + $0x38] sm:$0xff] %vm121_vm1, %v112_v0 }
  0x9e   :  { %128 = vst.msk [vmem:[%s300_s3 + $0x30] sm:$0xff] %vm121_vm1, %v111_v1  ;;  %v84_v2 = vpop.xlane.xlu1 %83 }
  0x9f   :  { %v81_v3 = vpop.xlane.xlu0 %80  ;;  %v114_v4 = vadd.f32 %v104_v49, %v84_v2 }
  0xa0   :  { %v113_v5 = vadd.f32 %v104_v49, %v81_v3 }
  0xa1   :  { %131 = vst.msk [vmem:[%s300_s3 + $0x48] sm:$0xff] %vm121_vm1, %v114_v4 }
  0xa2   :  { %130 = vst.msk [vmem:[%s300_s3 + $0x40] sm:$0xff] %vm121_vm1, %v113_v5  ;;  %v90_v6 = vpop.xlane.xlu1 %89 }
  0xa3   :  { %v87_v7 = vpop.xlane.xlu0 %86  ;;  %v116_v8 = vadd.f32 %v104_v49, %v90_v6 }
  0xa4   :  { %v115_v9 = vadd.f32 %v104_v49, %v87_v7 }
  0xa5   :  { %133 = vst.msk [vmem:[%s300_s3 + $0x58] sm:$0xff] %vm121_vm1, %v116_v8 }
  0xa6   :  { %132 = vst.msk [vmem:[%s300_s3 + $0x50] sm:$0xff] %vm121_vm1, %v115_v9  ;;  %v96_v10 = vpop.xlane.xlu1 %95 }
  0xa7   :  { %v93_v11 = vpop.xlane.xlu0 %92  ;;  %v118_v12 = vadd.f32 %v104_v49, %v96_v10 }
  0xa8   :  { %v117_v13 = vadd.f32 %v104_v49, %v93_v11 }
  0xa9   :  { %135 = vst.msk [vmem:[%s300_s3 + $0x68] sm:$0xff] %vm121_vm1, %v118_v12 }
  0xaa   :  { %134 = vst.msk [vmem:[%s300_s3 + $0x60] sm:$0xff] %vm121_vm1, %v117_v13  ;;  %v102_v14 = vpop.xlane.xlu1 %101 }
  0xab   :  { %v99_v15 = vpop.xlane.xlu0 %98  ;;  %v120_v16 = vadd.f32 %v104_v49, %v102_v14 }
  0xac   :  { %v119_v17 = vadd.f32 %v104_v49, %v99_v15 }
  0xad   :  { %137 = vst.msk [vmem:[%s300_s3 + $0x78] sm:$0xff] %vm121_vm1, %v120_v16 }
  0xae   :  { %136 = vst.msk [vmem:[%s300_s3 + $0x70] sm:$0xff] %vm121_vm1, %v119_v17 }

</bundles_post_ra>
